<compile_context>
chip_gen: v7x
topology: tpu7x:2x2x1
jax: 0.10.0
libtpu: 0.0.40
codegen_flags: <defaults>
</compile_context>

<pallas_src>
import functools

import jax
import jax.numpy as jnp
from jax.experimental import pallas as pl
from jax.experimental.pallas import tpu as pltpu


# ----------------------------- Pallas kernel --------------------------------

def _fused_mha_kernel(x_ref, wqkv_ref, wproj_ref, bproj_ref, o_ref,
                      *, num_heads, head_size):
    """Fused multi-head causal attention + projection; one batch per grid step.

    x_ref:     (1, T, C)   current batch element
    wqkv_ref:  (C, 3*C)    packed [Wq | Wk | Wv], heads packed along lanes
    wproj_ref: (C, C)      output projection weight (x @ W layout)
    bproj_ref: (1, C)      output projection bias
    o_ref:     (1, T, C)   lane-dense output block
    """
    x = x_ref[0]                                 # (T, C)
    T, C = x.shape

    # Single packed QKV matmul (one MXU push with N = 3*C instead of 3*H tiny ones).
    qkv = jnp.dot(x, wqkv_ref[...], preferred_element_type=jnp.float32)   # (T, 3C)
    q_all = qkv[:, 0:C]
    k_all = qkv[:, C:2 * C]
    v_all = qkv[:, 2 * C:3 * C]

    # Causal mask: keep col <= row.
    row = jax.lax.broadcasted_iota(jnp.int32, (T, T), 0)
    col = jax.lax.broadcasted_iota(jnp.int32, (T, T), 1)
    causal = col <= row

    head_outs = []
    for h in range(num_heads):                   # static, unrolled at trace time
        lo = h * head_size
        hi = lo + head_size
        q = q_all[:, lo:hi]                      # (T, hs)
        k = k_all[:, lo:hi]
        v = v_all[:, lo:hi]

        # wei = q @ k^T, contracting the hs axis directly (no explicit transpose).
        # NOTE: no 1/sqrt(head_size) scaling -- matches the source module.
        wei = jax.lax.dot_general(q, k, (((1,), (1,)), ((), ())),
                                  preferred_element_type=jnp.float32)     # (T, T)
        wei = jnp.where(causal, wei, -jnp.inf)

        # Softmax along last dim; reciprocal goes to the EUP slot.
        m = jnp.max(wei, axis=-1, keepdims=True)
        e = jnp.exp(wei - m)
        p = e * pl.reciprocal(jnp.sum(e, axis=-1, keepdims=True), approx=True)

        head_outs.append(jnp.dot(p, v, preferred_element_type=jnp.float32))  # (T, hs)

    cat = jnp.concatenate(head_outs, axis=-1)    # (T, C) -- lane-dense
    y = jnp.dot(cat, wproj_ref[...], preferred_element_type=jnp.float32) + bproj_ref[...]
    o_ref[0] = y.astype(o_ref.dtype)


# ----------------------------- JAX wrapper -----------------------------------

def multi_head_attention(x, wk, wq, wv, w_proj, b_proj):
    """x: (B, T, C); wk/wq/wv: (H, C, hs) (x @ W layout); w_proj: (C, C); b_proj: (C,)."""
    B, T, C = x.shape
    H, _, hs = wk.shape
    assert H * hs == C, "num_heads * head_size must equal n_embd"

    # Pack heads along the lane axis: (H, C, hs) -> (C, H*hs).
    def pack(w):
        return jnp.transpose(w, (1, 0, 2)).reshape(C, H * hs)

    w_qkv = jnp.concatenate([pack(wq), pack(wk), pack(wv)], axis=-1)      # (C, 3C)

    kernel = functools.partial(_fused_mha_kernel, num_heads=H, head_size=hs)

    out = pl.pallas_call(
        kernel,
        out_shape=jax.ShapeDtypeStruct((B, T, C), x.dtype),
        grid_spec=pltpu.PrefetchScalarGridSpec(
            num_scalar_prefetch=0,
            grid=(B,),
            in_specs=[
                pl.BlockSpec((1, T, C), lambda b: (b, 0, 0)),
                pl.BlockSpec((C, 3 * C), lambda b: (0, 0)),
                pl.BlockSpec((C, C), lambda b: (0, 0)),
                pl.BlockSpec((1, C), lambda b: (0, 0)),
            ],
            out_specs=pl.BlockSpec((1, T, C), lambda b: (b, 0, 0)),
        ),
        compiler_params=pltpu.CompilerParams(
            dimension_semantics=("parallel",)),
    )(x, w_qkv, w_proj, b_proj.reshape(1, C))
    return out


# ----------------------------- reference -------------------------------------

def _reference(x, wk, wq, wv, w_proj, b_proj):
    B, T, C = x.shape
    H, _, hs = wk.shape
    k = jnp.einsum('btc,hcs->bhts', x, wk)
    q = jnp.einsum('btc,hcs->bhts', x, wq)
    v = jnp.einsum('btc,hcs->bhts', x, wv)
    wei = jnp.einsum('bhts,bhus->bhtu', q, k)              # no scaling (matches module)
    mask = jnp.tril(jnp.ones((T, T), dtype=bool))
    wei = jnp.where(mask[None, None], wei, -jnp.inf)
    wei = jax.nn.softmax(wei, axis=-1)
    out = jnp.einsum('bhtu,bhus->bhts', wei, v)
    cat = jnp.transpose(out, (0, 2, 1, 3)).reshape(B, T, H * hs)
    return cat @ w_proj + b_proj


# ----------------------------- main -------------------------------------------

if __name__ == "__main__":
    # Small shapes consistent with the module: 4 heads of size 8, n_embd -> 32.
    B, T, C = 2, 8, 32
    H, hs = 4, 8

    key = jax.random.PRNGKey(0)
    kx, kk, kq, kv, kp, kb = jax.random.split(key, 6)

    x = jax.random.normal(kx, (B, T, C), dtype=jnp.float32)
    # Per-head weights stored as (H, C, hs) == transpose of nn.Linear's (hs, C).
    wk = jax.random.normal(kk, (H, C, hs), dtype=jnp.float32) * 0.1
    wq = jax.random.normal(kq, (H, C, hs), dtype=jnp.float32) * 0.1
    wv = jax.random.normal(kv, (H, C, hs), dtype=jnp.float32) * 0.1
    w_proj = jax.random.normal(kp, (C, C), dtype=jnp.float32) * 0.1
    b_proj = jax.random.normal(kb, (C,), dtype=jnp.float32) * 0.1

    out = multi_head_attention(x, wk, wq, wv, w_proj, b_proj)
    out = jax.block_until_ready(out)

    ref = _reference(x, wk, wq, wv, w_proj, b_proj)
    assert out.shape == (B, T, C)
    # Slightly loose tolerance to cover the EUP approximate reciprocal.
    assert jnp.allclose(out, ref, atol=1e-3, rtol=1e-3), "mismatch vs reference"

    print("KERNEL_OK")
</pallas_src>

<mosaic_0001>
module attributes {stable_mosaic.version = 11 : i64} {
  func.func @_fused_mha_kernel(%arg0: i32, %arg1: memref<1x8x32xf32, #tpu.memory_space<vmem>>, %arg2: memref<32x96xf32, #tpu.memory_space<vmem>>, %arg3: memref<32x32xf32, #tpu.memory_space<vmem>>, %arg4: memref<1x32xf32, #tpu.memory_space<vmem>>, %arg5: memref<1x8x32xf32, #tpu.memory_space<vmem>>) attributes {dimension_semantics = [#tpu.dimension_semantics<parallel>], iteration_bounds = array<i64: 2>, scalar_prefetch = 0 : i64, scratch_operands = 0 : i64, tpu.core_type = #tpu.core_type<tc>, window_params = [{transform_indices = @transform_0, window_bounds = array<i64: 1, 8, 32>}, {pipeline_mode = #tpu.pipeline_mode<synchronous>, transform_indices = @transform_1, window_bounds = array<i64: 32, 96>}, {pipeline_mode = #tpu.pipeline_mode<synchronous>, transform_indices = @transform_2, window_bounds = array<i64: 32, 32>}, {pipeline_mode = #tpu.pipeline_mode<synchronous>, transform_indices = @transform_3, window_bounds = array<i64: 1, 32>}, {transform_indices = @transform_4, window_bounds = array<i64: 1, 8, 32>}]} {
    %c0 = arith.constant 0 : index
    %c0_0 = arith.constant 0 : index
    %c0_1 = arith.constant 0 : index
    %0 = vector.load %arg1[%c0, %c0_0, %c0_1] : memref<1x8x32xf32, #tpu.memory_space<vmem>>, vector<1x8x32xf32>
    %1 = vector.shape_cast %0 : vector<1x8x32xf32> to vector<8x32xf32>
    %c0_2 = arith.constant 0 : index
    %c0_3 = arith.constant 0 : index
    %2 = vector.load %arg2[%c0_2, %c0_3] : memref<32x96xf32, #tpu.memory_space<vmem>>, vector<32x96xf32>
    %cst = arith.constant dense<0.000000e+00> : vector<8x96xf32>
    %3 = tpu.matmul %1, %2, %cst {dimension_numbers = #tpu.dot_dimension_numbers<[1], [0], [0], [1], [0, 0, 1, 1], [], []>} : vector<8x32xf32>, vector<32x96xf32>, vector<8x96xf32> -> vector<8x96xf32>
    %4 = vector.extract_strided_slice %3 {offsets = [0, 0], sizes = [8, 32], strides = [1, 1]} : vector<8x96xf32> to vector<8x32xf32>
    %5 = vector.extract_strided_slice %3 {offsets = [0, 32], sizes = [8, 32], strides = [1, 1]} : vector<8x96xf32> to vector<8x32xf32>
    %6 = vector.extract_strided_slice %3 {offsets = [0, 64], sizes = [8, 32], strides = [1, 1]} : vector<8x96xf32> to vector<8x32xf32>
    %7 = tpu.iota {dimensions = array<i32: 0>} : vector<8x8xi32>
    %8 = tpu.iota {dimensions = array<i32: 1>} : vector<8x8xi32>
    %9 = arith.cmpi sle, %8, %7 : vector<8x8xi32>
    %10 = vector.extract_strided_slice %4 {offsets = [0, 0], sizes = [8, 8], strides = [1, 1]} : vector<8x32xf32> to vector<8x8xf32>
    %11 = vector.extract_strided_slice %5 {offsets = [0, 0], sizes = [8, 8], strides = [1, 1]} : vector<8x32xf32> to vector<8x8xf32>
    %12 = vector.extract_strided_slice %6 {offsets = [0, 0], sizes = [8, 8], strides = [1, 1]} : vector<8x32xf32> to vector<8x8xf32>
    %cst_4 = arith.constant dense<0.000000e+00> : vector<8x8xf32>
    %13 = tpu.matmul %10, %11, %cst_4 {dimension_numbers = #tpu.dot_dimension_numbers<[1], [1], [0], [0], [0, 0, 1, 0], [], []>} : vector<8x8xf32>, vector<8x8xf32>, vector<8x8xf32> -> vector<8x8xf32>
    %cst_5 = arith.constant 0xFF800000 : f32
    %14 = vector.broadcast %cst_5 : f32 to vector<8x8xf32>
    %15 = arith.select %9, %13, %14 : vector<8x8xi1>, vector<8x8xf32>
    %cst_6 = arith.constant dense<0xFF800000> : vector<8xf32>
    %16 = vector.multi_reduction <maximumf>, %15, %cst_6 [1] : vector<8x8xf32> to vector<8xf32>
    %17 = vector.shape_cast %16 : vector<8xf32> to vector<8x1xf32>
    %18 = vector.broadcast %17 : vector<8x1xf32> to vector<8x8xf32>
    %19 = arith.subf %15, %18 : vector<8x8xf32>
    %20 = math.exp %19 : vector<8x8xf32>
    %cst_7 = arith.constant dense<0.000000e+00> : vector<8xf32>
    %21 = vector.multi_reduction <add>, %20, %cst_7 [1] : vector<8x8xf32> to vector<8xf32>
    %22 = vector.shape_cast %21 : vector<8xf32> to vector<8x1xf32>
    %23 = tpu.reciprocal %22 {approx = true} : vector<8x1xf32> -> vector<8x1xf32>
    %24 = vector.broadcast %23 : vector<8x1xf32> to vector<8x8xf32>
    %25 = arith.mulf %20, %24 : vector<8x8xf32>
    %cst_8 = arith.constant dense<0.000000e+00> : vector<8x8xf32>
    %26 = tpu.matmul %25, %12, %cst_8 {dimension_numbers = #tpu.dot_dimension_numbers<[1], [0], [0], [1], [0, 0, 1, 1], [], []>} : vector<8x8xf32>, vector<8x8xf32>, vector<8x8xf32> -> vector<8x8xf32>
    %27 = vector.extract_strided_slice %4 {offsets = [0, 8], sizes = [8, 8], strides = [1, 1]} : vector<8x32xf32> to vector<8x8xf32>
    %28 = vector.extract_strided_slice %5 {offsets = [0, 8], sizes = [8, 8], strides = [1, 1]} : vector<8x32xf32> to vector<8x8xf32>
    %29 = vector.extract_strided_slice %6 {offsets = [0, 8], sizes = [8, 8], strides = [1, 1]} : vector<8x32xf32> to vector<8x8xf32>
    %cst_9 = arith.constant dense<0.000000e+00> : vector<8x8xf32>
    %30 = tpu.matmul %27, %28, %cst_9 {dimension_numbers = #tpu.dot_dimension_numbers<[1], [1], [0], [0], [0, 0, 1, 0], [], []>} : vector<8x8xf32>, vector<8x8xf32>, vector<8x8xf32> -> vector<8x8xf32>
    %cst_10 = arith.constant 0xFF800000 : f32
    %31 = vector.broadcast %cst_10 : f32 to vector<8x8xf32>
    %32 = arith.select %9, %30, %31 : vector<8x8xi1>, vector<8x8xf32>
    %cst_11 = arith.constant dense<0xFF800000> : vector<8xf32>
    %33 = vector.multi_reduction <maximumf>, %32, %cst_11 [1] : vector<8x8xf32> to vector<8xf32>
    %34 = vector.shape_cast %33 : vector<8xf32> to vector<8x1xf32>
    %35 = vector.broadcast %34 : vector<8x1xf32> to vector<8x8xf32>
    %36 = arith.subf %32, %35 : vector<8x8xf32>
    %37 = math.exp %36 : vector<8x8xf32>
    %cst_12 = arith.constant dense<0.000000e+00> : vector<8xf32>
    %38 = vector.multi_reduction <add>, %37, %cst_12 [1] : vector<8x8xf32> to vector<8xf32>
    %39 = vector.shape_cast %38 : vector<8xf32> to vector<8x1xf32>
    %40 = tpu.reciprocal %39 {approx = true} : vector<8x1xf32> -> vector<8x1xf32>
    %41 = vector.broadcast %40 : vector<8x1xf32> to vector<8x8xf32>
    %42 = arith.mulf %37, %41 : vector<8x8xf32>
    %cst_13 = arith.constant dense<0.000000e+00> : vector<8x8xf32>
    %43 = tpu.matmul %42, %29, %cst_13 {dimension_numbers = #tpu.dot_dimension_numbers<[1], [0], [0], [1], [0, 0, 1, 1], [], []>} : vector<8x8xf32>, vector<8x8xf32>, vector<8x8xf32> -> vector<8x8xf32>
    %44 = vector.extract_strided_slice %4 {offsets = [0, 16], sizes = [8, 8], strides = [1, 1]} : vector<8x32xf32> to vector<8x8xf32>
    %45 = vector.extract_strided_slice %5 {offsets = [0, 16], sizes = [8, 8], strides = [1, 1]} : vector<8x32xf32> to vector<8x8xf32>
    %46 = vector.extract_strided_slice %6 {offsets = [0, 16], sizes = [8, 8], strides = [1, 1]} : vector<8x32xf32> to vector<8x8xf32>
    %cst_14 = arith.constant dense<0.000000e+00> : vector<8x8xf32>
    %47 = tpu.matmul %44, %45, %cst_14 {dimension_numbers = #tpu.dot_dimension_numbers<[1], [1], [0], [0], [0, 0, 1, 0], [], []>} : vector<8x8xf32>, vector<8x8xf32>, vector<8x8xf32> -> vector<8x8xf32>
    %cst_15 = arith.constant 0xFF800000 : f32
    %48 = vector.broadcast %cst_15 : f32 to vector<8x8xf32>
    %49 = arith.select %9, %47, %48 : vector<8x8xi1>, vector<8x8xf32>
    %cst_16 = arith.constant dense<0xFF800000> : vector<8xf32>
    %50 = vector.multi_reduction <maximumf>, %49, %cst_16 [1] : vector<8x8xf32> to vector<8xf32>
    %51 = vector.shape_cast %50 : vector<8xf32> to vector<8x1xf32>
    %52 = vector.broadcast %51 : vector<8x1xf32> to vector<8x8xf32>
    %53 = arith.subf %49, %52 : vector<8x8xf32>
    %54 = math.exp %53 : vector<8x8xf32>
    %cst_17 = arith.constant dense<0.000000e+00> : vector<8xf32>
    %55 = vector.multi_reduction <add>, %54, %cst_17 [1] : vector<8x8xf32> to vector<8xf32>
    %56 = vector.shape_cast %55 : vector<8xf32> to vector<8x1xf32>
    %57 = tpu.reciprocal %56 {approx = true} : vector<8x1xf32> -> vector<8x1xf32>
    %58 = vector.broadcast %57 : vector<8x1xf32> to vector<8x8xf32>
    %59 = arith.mulf %54, %58 : vector<8x8xf32>
    %cst_18 = arith.constant dense<0.000000e+00> : vector<8x8xf32>
    %60 = tpu.matmul %59, %46, %cst_18 {dimension_numbers = #tpu.dot_dimension_numbers<[1], [0], [0], [1], [0, 0, 1, 1], [], []>} : vector<8x8xf32>, vector<8x8xf32>, vector<8x8xf32> -> vector<8x8xf32>
    %61 = vector.extract_strided_slice %4 {offsets = [0, 24], sizes = [8, 8], strides = [1, 1]} : vector<8x32xf32> to vector<8x8xf32>
    %62 = vector.extract_strided_slice %5 {offsets = [0, 24], sizes = [8, 8], strides = [1, 1]} : vector<8x32xf32> to vector<8x8xf32>
    %63 = vector.extract_strided_slice %6 {offsets = [0, 24], sizes = [8, 8], strides = [1, 1]} : vector<8x32xf32> to vector<8x8xf32>
    %cst_19 = arith.constant dense<0.000000e+00> : vector<8x8xf32>
    %64 = tpu.matmul %61, %62, %cst_19 {dimension_numbers = #tpu.dot_dimension_numbers<[1], [1], [0], [0], [0, 0, 1, 0], [], []>} : vector<8x8xf32>, vector<8x8xf32>, vector<8x8xf32> -> vector<8x8xf32>
    %cst_20 = arith.constant 0xFF800000 : f32
    %65 = vector.broadcast %cst_20 : f32 to vector<8x8xf32>
    %66 = arith.select %9, %64, %65 : vector<8x8xi1>, vector<8x8xf32>
    %cst_21 = arith.constant dense<0xFF800000> : vector<8xf32>
    %67 = vector.multi_reduction <maximumf>, %66, %cst_21 [1] : vector<8x8xf32> to vector<8xf32>
    %68 = vector.shape_cast %67 : vector<8xf32> to vector<8x1xf32>
    %69 = vector.broadcast %68 : vector<8x1xf32> to vector<8x8xf32>
    %70 = arith.subf %66, %69 : vector<8x8xf32>
    %71 = math.exp %70 : vector<8x8xf32>
    %cst_22 = arith.constant dense<0.000000e+00> : vector<8xf32>
    %72 = vector.multi_reduction <add>, %71, %cst_22 [1] : vector<8x8xf32> to vector<8xf32>
    %73 = vector.shape_cast %72 : vector<8xf32> to vector<8x1xf32>
    %74 = tpu.reciprocal %73 {approx = true} : vector<8x1xf32> -> vector<8x1xf32>
    %75 = vector.broadcast %74 : vector<8x1xf32> to vector<8x8xf32>
    %76 = arith.mulf %71, %75 : vector<8x8xf32>
    %cst_23 = arith.constant dense<0.000000e+00> : vector<8x8xf32>
    %77 = tpu.matmul %76, %63, %cst_23 {dimension_numbers = #tpu.dot_dimension_numbers<[1], [0], [0], [1], [0, 0, 1, 1], [], []>} : vector<8x8xf32>, vector<8x8xf32>, vector<8x8xf32> -> vector<8x8xf32>
    %78 = tpu.concatenate %26, %43, %60, %77 in 1 : vector<8x8xf32>, vector<8x8xf32>, vector<8x8xf32>, vector<8x8xf32> -> vector<8x32xf32>
    %c0_24 = arith.constant 0 : index
    %c0_25 = arith.constant 0 : index
    %79 = vector.load %arg3[%c0_24, %c0_25] : memref<32x32xf32, #tpu.memory_space<vmem>>, vector<32x32xf32>
    %cst_26 = arith.constant dense<0.000000e+00> : vector<8x32xf32>
    %80 = tpu.matmul %78, %79, %cst_26 {dimension_numbers = #tpu.dot_dimension_numbers<[1], [0], [0], [1], [0, 0, 1, 1], [], []>} : vector<8x32xf32>, vector<32x32xf32>, vector<8x32xf32> -> vector<8x32xf32>
    %c0_27 = arith.constant 0 : index
    %c0_28 = arith.constant 0 : index
    %81 = vector.load %arg4[%c0_27, %c0_28] : memref<1x32xf32, #tpu.memory_space<vmem>>, vector<1x32xf32>
    %82 = vector.broadcast %81 : vector<1x32xf32> to vector<8x32xf32>
    %83 = arith.addf %80, %82 : vector<8x32xf32>
    %c0_29 = arith.constant 0 : index
    %c0_30 = arith.constant 0 : index
    %c0_31 = arith.constant 0 : index
    %84 = vector.load %arg5[%c0_29, %c0_30, %c0_31] : memref<1x8x32xf32, #tpu.memory_space<vmem>>, vector<1x8x32xf32>
    %85 = vector.shape_cast %84 : vector<1x8x32xf32> to vector<8x32xf32>
    %86 = vector.shape_cast %83 : vector<8x32xf32> to vector<1x8x32xf32>
    tpu.vector_store %arg5[%c0_29, %c0_30, %c0_31], %86 {strides = array<i32>} : memref<1x8x32xf32, #tpu.memory_space<vmem>>, vector<1x8x32xf32>,
    return
  }
  func.func @transform_0(%arg0: i32) -> (i32, i32, i32) {
    %c0_i32 = arith.constant 0 : i32
    %c0_i32_0 = arith.constant 0 : i32
    %c0_i32_1 = arith.constant 0 : i32
    return %arg0, %c0_i32, %c0_i32_0 : i32, i32, i32
  }
  func.func @transform_1(%arg0: i32) -> (i32, i32) {
    %c0_i32 = arith.constant 0 : i32
    %c0_i32_0 = arith.constant 0 : i32
    %c0_i32_1 = arith.constant 0 : i32
    return %c0_i32, %c0_i32_0 : i32, i32
  }
  func.func @transform_2(%arg0: i32) -> (i32, i32) {
    %c0_i32 = arith.constant 0 : i32
    %c0_i32_0 = arith.constant 0 : i32
    %c0_i32_1 = arith.constant 0 : i32
    return %c0_i32, %c0_i32_0 : i32, i32
  }
  func.func @transform_3(%arg0: i32) -> (i32, i32) {
    %c0_i32 = arith.constant 0 : i32
    %c0_i32_0 = arith.constant 0 : i32
    %c0_i32_1 = arith.constant 0 : i32
    return %c0_i32, %c0_i32_0 : i32, i32
  }
  func.func @transform_4(%arg0: i32) -> (i32, i32, i32) {
    %c0_i32 = arith.constant 0 : i32
    %c0_i32_0 = arith.constant 0 : i32
    %c0_i32_1 = arith.constant 0 : i32
    return %arg0, %c0_i32, %c0_i32_0 : i32, i32, i32
  }
}

</mosaic_0001>

<bundles_post_ra>
// kernel: tpu_custom_call.1
= control target key start
LH: loop header
LB: loop body
LE: loop exit
PB: predicated region body
PF: predicated region fallthrough
CT: control target
= control target key end

     0   :  { %9 = vsyncpa [#allocation3], 0  ;;  %s1947_s0 = inlined_call_operand.hbm [shape: f32[2,8,32], index: 0, kind: input, shape index: {}]   ;;  %s1948_s1 = inlined_call_operand.hbm [shape: f32[32,96], index: 1, kind: input, shape index: {}]   ;;  %s1949_s2 = inlined_call_operand.hbm [shape: f32[32,32], index: 2, kind: input, shape index: {}]   ;;  %s1950_s3 = inlined_call_operand.vmem [shape: f32[1,32], index: 3, kind: input, shape index: {}]   ;;  %s1951_s4 = inlined_call_operand.hbm [shape: f32[2,8,32], index: 4, kind: output, shape index: {}]  }
   0x1   :  { %11 = vsyncpa [#allocation3 + $0x1], 0 }
   0x2   :  { %12 = vsyncpa [#allocation6], 0 }
   0x3   :  { %13 = vsyncpa [#allocation4], 0 }
   0x4   :  { %15 = vsyncpa [#allocation4 + $0x1], 0  ;;  %s1634_s15 = smov 0   ;;  %s1636_s16 = smov 0  }
   0x5   :  { %s1638_s17 = smov 0   ;;  %s1640_s18 = smov 0  }
   0x6 LB: > { %s1655_s19 = sadd.s32 4294967295, %s1584_s18   ;;  %s1195_s20 = sadd.s32 4294967294, %s1584_s18   ;;  %s1584_s18 = sphi %s1640_s18, %s1971_s18   ;;  %s1580_s17 = sphi %s1638_s17, %s1970_s17   ;;  %s1576_s16 = sphi %s1636_s16, %s1969_s16   ;;  %s1572_s15 = sphi %s1634_s15, %s1968_s15  }
   0x7   : > { %p41_p0 = scmp.ne.s32.totalorder %s1576_s16, %s1572_s15  ;;  %p1952_p1 = scmp.eq.s32.totalorder %s1655_s19, 0 }
   0x8   : > { %p134_p3 = scmp.eq.s32.totalorder %s1195_s20, 1  ;;  %p1196_p5 = scmp.ge.s32.totalorder %s1584_s18, 1 }
   0x9   : > { %p1664_p4 = por %p1952_p1, %p41_p0  ;;  %p141_p7 = scmp.lt.s32.totalorder %s1584_s18, 3 }
   0xa   : > { %p1669_p6 = por %p134_p3, %p41_p0  ;;  %s1586_s24 = smov [#allocation5]  }
   0xb   : > { %s1955_s21 = scalar_select %p1664_p4, 1, 0 }
   0xc   : > { %s1956_s22 = scalar_select %p1669_p6, 1, 0 }
   0xd   : > { %p1674_p8 = pnand %p1196_p5, %p141_p7  ;;  %s153_s25 = sshll.u32 %s1586_s24, 4  ;;  %s1678_s25 = int_to_ptr.vmem [resolvable:$true] %s153_s25 }
   0xe   : > { %s1587_s27 = smov [#allocation7]   ;;  %s1428_s5 = scalar_lea.hbm %s1948_s1, 512 }
   0xf   : > { %p1338_p9 = pneg %p1674_p8  ;;  %s166_s28 = sshll.u32 %s1587_s27, 4  ;;  %s1689_s28 = int_to_ptr.vmem [resolvable:$true] %s166_s28 }
  0x10   : > { %p1429_p12 = scmp.ne.s32.totalorder %s1948_s1, %s1428_s5  ;;  %p1435_p5 = scmp.lt.u32.totalorder %s1428_s5, %s1948_s1 }
  0x11   : > { %p1685_p11 = pnand %p1338_p9, %p1952_p1 }
  0x13   : > { %p1430_p13 = pneg %p1685_p11 }
  0x15   : > { %p1431_p0 = pnand %p1430_p13, %p1429_p12 }
  0x17   : > { %p1432_p3 = pneg %p1431_p0 }
  0x19   : > { %p1437_p7 = pnand %p1435_p5, %p1432_p3 }
  0x1b   : > { %1440 = shalt.err (!%p1437_p7)
}
  0x1c   : > { %s1441_s10 = scalar_lea.vmem %s1678_s25, 512  ;;  %p1449_p2 = scmp.lt.s32.totalorder %s1678_s25, %s1678_s25 }
  0x1d   : > { %p1442_p9 = scmp.ne.s32.totalorder %s1678_s25, %s1441_s10  ;;  %p1450_p12 = scmp.lt.s32.totalorder %s1441_s10, %s1441_s10 }
  0x1f   : > { %p1444_p10 = pnand %p1442_p9, %p1430_p13  ;;  %p1451_p0 = por %p1450_p12, %p1449_p2 }
  0x21   : > { %p1445_p1 = pneg %p1444_p10 }
  0x23   : > { %p1452_p6 = pnand %p1451_p0, %p1445_p1 }
  0x25   : > { %1455 = shalt.err (!%p1452_p6)
}
  0x26   : > { %s1588_s11 = smov 128   ;;  %s1589_s12 = smov 8  }
  0x27   : > { %1341 = dma.hbm_to_vmem [thread:$0]  (!%p1685_p11), %s1948_s1, 512, %s1678_s25, [#allocation6], %s1588_s11, %s1588_s11, %s1589_s12  }
  0x28   : > { %s1456_s27 = scalar_lea.hbm %s1949_s2, 512 }
  0x29   : > { %p1457_p2 = scmp.ne.s32.totalorder %s1949_s2, %s1456_s27  ;;  %p1463_p10 = scmp.lt.u32.totalorder %s1456_s27, %s1949_s2 }
  0x2b   : > { %p1459_p1 = pnand %p1457_p2, %p1430_p13 }
  0x2d   : > { %p1460_p6 = pneg %p1459_p1 }
  0x2f   : > { %p1465_p3 = pnand %p1463_p10, %p1460_p6 }
  0x31   : > { %1468 = shalt.err (!%p1465_p3)
}
  0x32   : > { %s1469_s25 = scalar_lea.vmem %s1689_s28, 512  ;;  %p1477_p12 = scmp.lt.s32.totalorder %s1689_s28, %s1689_s28 }
  0x33   : > { %p1470_p5 = scmp.ne.s32.totalorder %s1689_s28, %s1469_s25  ;;  %p1478_p0 = scmp.lt.s32.totalorder %s1469_s25, %s1469_s25 }
  0x35   : > { %p1472_p7 = pnand %p1470_p5, %p1430_p13  ;;  %p1479_p2 = por %p1478_p0, %p1477_p12 }
  0x37   : > { %p1473_p9 = pneg %p1472_p7 }
  0x39   : > { %p1480_p1 = pnand %p1479_p2, %p1473_p9 }
  0x3b   : > { %1483 = shalt.err (!%p1480_p1)
}
  0x3c   : > { %1344 = dma.hbm_to_vmem [thread:$0]  (!%p1685_p11), %s1949_s2, 512, %s1689_s28, [#allocation6], %s1588_s11, %s1588_s11, %s1589_s12  }
  0x3d   : > { %s1744_s9 = sadd.s32 1, %s1584_s18   ;;  %s28_s26 = sadd.s32 1, %s1580_s17 }
  0x3e   : > { %s25_s10 = ssub.s32 %s1584_s18, %s1744_s9  ;;  %p35_p13 = scmp.ne.s32.totalorder %s1580_s17, %s1576_s16 }
  0x3f   : > { %p26_p6 = scmp.eq.s32.totalorder %s25_s10, 0  ;;  %p36_p10 = scmp.eq.s32.totalorder %s1584_s18, 0 }
  0x40   : > { %p1959_p3 = scmp.eq.s32.totalorder %s1655_s19, 1  ;;  %p1355_p7 = scmp.lt.s32.totalorder %s1584_s18, 2 }
  0x41   : > { %s1760_s14 = scalar_select %p26_p6, %s1580_s17, %s28_s26  }
  0x42   : > { %p1754_p5 = por %p1959_p3, %p35_p13  ;;  %p37_p9 = por %p36_p10, %p35_p13 }
  0x43   : > { %s183_s20 = sand.u32 1, %s1580_s17   ;;  %s1201_s28 = sshll.u32 %s1584_s18, 7 }
  0x44   : > { %s1960_s13 = scalar_select %p1754_p5, 1, 0 }
  0x45   : > { %s1200_s24 = sshll.u32 %s183_s20, 3  ;;  %s1767_s27 = scalar_lea.hbm %s1947_s0, %s1201_s28 }
  0x46   : > { %s187_s29 = scalar_lea.vmem [#allocation2], %s1200_s24  ;;  %p1771_p11 = pnand %p1355_p7, %p37_p9 }
  0x47   : > { %s194_s30 = sshll.u32 %s187_s29, 4  ;;  %s184_s6 = scalar_lea.sflag [#allocation3], %s183_s20  ;;  %s1769_s30 = int_to_ptr.vmem [resolvable:$true] %s194_s30 }
  0x48   : > { %s1484_s25 = scalar_lea.hbm %s1767_s27, 128  ;;  %p1486_p0 = pneg %p1771_p11 }
  0x49   : > { %p1485_p12 = scmp.ne.s32.totalorder %s1767_s27, %s1484_s25  ;;  %s1489_s26 = scalar_lea.hbm %s1947_s0, 256 }
  0x4a   : > { %p1490_p13 = scmp.lt.u32.totalorder %s1767_s27, %s1947_s0  ;;  %p1491_p6 = scmp.lt.u32.totalorder %s1489_s26, %s1484_s25 }
  0x4b   : > { %p1487_p2 = pnand %p1486_p0, %p1485_p12  ;;  %p1493_p3 = scmp.lt.u32.totalorder %s1484_s25, %s1767_s27 }
  0x4c   : > { %p1492_p10 = por %p1491_p6, %p1490_p13 }
  0x4d   : > { %p1488_p1 = pneg %p1487_p2 }
  0x4e   : > { %p1494_p7 = por %p1493_p3, %p1492_p10 }
  0x50   : > { %p1495_p9 = pnand %p1494_p7, %p1488_p1 }
  0x52   : > { %1498 = shalt.err (!%p1495_p9)
}
  0x53   : > { %s1499_s20 = scalar_lea.vmem %s1769_s30, 128  ;;  %s1590_s28 = smov [#allocation2]  }
  0x54   : > { %p1500_p12 = scmp.ne.s32.totalorder %s1769_s30, %s1499_s20  ;;  %s1504_s11 = sshll.u32 %s1590_s28, 4  ;;  %s1505_s11 = int_to_ptr.vmem [resolvable:$false] %s1504_s11 }
  0x55   : > { %s1506_s12 = scalar_lea.vmem %s1505_s11, 256  ;;  %p1507_p4 = scmp.lt.s32.totalorder %s1769_s30, %s1505_s11 }
  0x56   : > { %p1502_p2 = pnand %p1500_p12, %p1486_p0  ;;  %p1508_p13 = scmp.lt.s32.totalorder %s1506_s12, %s1499_s20 }
  0x58   : > { %p1503_p5 = pneg %p1502_p2  ;;  %p1509_p6 = por %p1508_p13, %p1507_p4 }
  0x5a   : > { %p1510_p10 = pnand %p1509_p6, %p1503_p5 }
  0x5c   : > { %1513 = shalt.err (!%p1510_p10)
}
  0x5d   : > { %1348 = dma.hbm_to_vmem [thread:$0]  (!%p1771_p11), %s1767_s27, 128, %s1769_s30, %s184_s6  }
  0x5e   : > { %203 = sbr.rel (%p1674_p8) target bundleno = 2107 (0x83b), region = 36  ;;  %s1803_s29 = sand.u32 (!%p1674_p8), 1, %s1576_s16  }
  0x5f   : > { %s1203_s25 = sshll.u32 (!%p1674_p8), %s1803_s29, 3  ;;  %s206_s7 = scalar_lea.sflag (!%p1674_p8), [#allocation3], %s1803_s29 }
  0x60   : > { %s209_s8 = scalar_lea.vmem (!%p1674_p8), [#allocation2], %s1203_s25  ;;  %p1962_p4 = scmp.ne.s32.totalorder (!%p1674_p8), %s1955_s21, 0 }
  0x65   : > { %1559 = dma.done.wait (%p1962_p4), %s206_s7, 128  }
  0x66   : > { %1561 = vsyncadd (%p1962_p4), %s206_s7, 4294967168  ;;  %p1963_p5 = scmp.eq.s32.totalorder %s1655_s19, 0 }
  0x68   : > { %1563 = dma.done.wait (%p1963_p5), [#allocation6], 1024   ;;  %p1964_p8 = pmov %p1963_p5 }
  0x69   : > { %v1591_v0 = vmov 0.0|0.0   ;;  %vm1592_vm0 = vmmov 0   ;;  %v1593_v1 = vmov 0.0   ;;  %v243_v2 = vld [vmem:[#allocation5] sm:$0xff]  ;;  %v244_v3 = vld [vmem:[#allocation5 + $0x8] sm:$0xff]  ;;  %v245_v4 = vld [vmem:[#allocation5 + $0x10] sm:$0xff]  ;;  %v321_v16 = vlaneseq }
  0x6a   : > { %1565 = vsyncadd (%p1964_p8), [#allocation6], 4294966272  ;;  %1314 = vmatprep.subr.bf16.mxu0 %v1591_v0  ;;  %1260 = vmatprep.mubr.msk.f32.mxu0 %vm1592_vm0, %v1593_v1  ;;  %v1315_v5 = vpack.c.bf16 %v244_v3, %v243_v2  ;;  %v246_v6 = vld [vmem:[#allocation5 + $0x18] sm:$0xff]  ;;  %vm247_vm1 = vcmask 261120   ;;  %s1594_s21 = smov 64   ;;  %s1595_s23 = smov 96  }
  0x6b   : > { %1263 = vmatprep.subr.mxu1 %v1593_v1  ;;  %1265 = vmatprep.mubr.msk.f32.mxu1 %vm1592_vm0, %v1593_v1  ;;  %v1318_v7 = vpack.c.bf16 %v246_v6, %v245_v4  ;;  %v242_v8 = vld [vmem:[%s209_s8] sm:$0xff]  ;;  %s1596_s27 = smov 88   ;;  %s1597_s30 = smov 120   ;;  %vm329_vm2 = vcmask 64512   ;;  %v322_v17 = vshrl.u32 %v321_v16, 7  ;;  %v324_v18 = vand.u32 127, %v321_v16 }
  0x6c   : > { %1316 = vmatpush3.bf16.msra.mxu0 %v1315_v5  ;;  %s1598_s5 = smov 80   ;;  %s1599_s6 = smov 72   ;;  %v1009_v16 = vld [vmem:[#allocation7 + $0x10] sm:$0xff]  ;;  %vm1003_vm4 = vcmask 130048   ;;  %vm1005_vm5 = vcmask 195584  }
  0x6d   : > { %1317 = vmatprep.subr.bf16.mxu0 %v1591_v0  ;;  %vm325_vm3 = vcmp.le.s32.totalorder %v324_v18, %v322_v17  ;;  %s1600_s26 = smov 112   ;;  %s1601_s10 = smov 104   ;;  %v1010_v17 = vld [vmem:[#allocation7 + $0x18] sm:$0xff] }
  0x6e   : > { %s1602_s24 = smov 56   ;;  %s1603_s20 = smov 48   ;;  %v1324_v18 = vpack.c.bf16 %v1010_v17, %v1009_v16 }
  0x6f   : > { %s1604_s28 = smov 40   ;;  %s1605_s11 = smov 8  }
  0x70   : > { %1319 = vmatpush3.bf16.msra.mxu0 %v1318_v7  ;;  %s1606_s12 = smov 16   ;;  %s1607_s7 = smov 24  }
  0x71   : > { %1283 = vmatprep.subr.mxu0 %v1593_v1  ;;  %p1965_p0 = scmp.ne.s32.totalorder %s1960_s13, 0 }
  0x73   : > { %1261 = vmatmul.mubr.msk.f32.vlgmr.msra.gmra.mrb[0].mxu0 %vm247_vm1, %v242_v8 }
  0x74   : > { %1285 = vmatprep.mubr.msk.f32.mxu0 %vm1592_vm0, %v1593_v1 }
 0x146   : > { %v1828_v9 = vpop.f32.mrb[0].mxu0 }
 0x147   : > { %416 = vrot.lane.b32.xlu1 %v1828_v9, %s1594_s21  ;;  %327 = vrot.lane.b32.xlu0 %v1828_v9, %s1595_s23  ;;  %v1262_v10 = vpop.f32.mrb[1].mxu0  ;;  %s1223_s23 = sshll.u32 %s1655_s19, 7 }
 0x14b   : > { %494 = vrot.lane.b32.xlu1 %v1828_v9, %s1596_s27  ;;  %s241_s27 = scalar_lea.vmem [#allocation8], %s1203_s25  ;;  %s1608_s25 = smov [#allocation8]  }
 0x14f   : > { %492 = vrot.lane.b32.xlu1 %v1828_v9, %s1597_s30  ;;  %s1106_s30 = sshll.u32 %s241_s27, 4  ;;  %s1904_s30 = int_to_ptr.vmem [resolvable:$true] %s1106_s30 }
 0x150   : > { %s1514_s19 = scalar_lea.vmem %s1904_s30, 128 }
 0x151   : > { %p1515_p11 = scmp.ne.s32.totalorder %s1904_s30, %s1514_s19 }
 0x153   : > { %660 = vrot.lane.b32.xlu1 %v1828_v9, %s1598_s5  ;;  %p1516_p1 = pnand %p1515_p11, %p1965_p0 }
 0x155   : > { %p1517_p3 = pneg %p1516_p1 }
 0x1b9   : > { %v417_v11 = vpop.permute.xlu1 %416  ;;  %v328_v12 = vpop.permute.xlu0 %327 }
 0x1ba   : > { %1264 = vmatpush3.xpose.msk.msra.mxu1 %vm329_vm2, %v328_v12 }
 0x1bb   : > { %1268 = vmatprep.subr.mxu1 %v1593_v1 }
 0x1bd   : > { %v495_v13 = vpop.permute.xlu1 %494  ;;  %1266 = vmatmul.mubr.msk.f32.vlgmr.msra.gmra.mrb[0].mxu1 %vm329_vm2, %v1828_v9 }
 0x1be   : > { %1269 = vmatpush3.msra.mxu1 %v417_v11  ;;  %1270 = vmatprep.mubr.msk.f32.mxu1 %vm1592_vm0, %v1593_v1 }
 0x1bf   : > { %1273 = vmatprep.subr.mxu1 %v1593_v1 }
 0x1c1   : > { %v493_v14 = vpop.permute.xlu1 %492 }
 0x1c5   : > { %v661_v15 = vpop.permute.xlu1 %660 }
 0x1c6   : > { %1284 = vmatpush3.xpose.msk.msra.mxu0 %vm329_vm2, %v661_v15 }
 0x1c7   : > { %1293 = vmatprep.subr.mxu0 %v1593_v1 }
 0x290   : > { %v400_v19 = vpop.f32.mrb[0].mxu1 }
 0x291   : > { %v404_v20 = vsel %vm325_vm3, %v400_v19, -inf  ;;  %v1267_v21 = vpop.f32.mrb[1].mxu1 }
 0x292   : > { %v405_v22 = vsel %vm329_vm2, %v404_v20, -inf }
 0x293   : > { %406 = vmax.xlane.f32.xlu0 %v405_v22 }
 0x2a9   : > { %826 = vrot.lane.b32.xlu0 %v1828_v9, %s1599_s6 }
 0x320   : > { %v407_v23 = vpop.xlane.xlu0 %406 }
 0x321   : > { %v408_v24 = vsub.f32 %v404_v20, %v407_v23 }
 0x323   : > { %v409_v25 = vmul.f32 1.442695, %v408_v24 }
 0x324   : > { %v827_v30 = vpop.permute.xlu0 %826 }
 0x325   : > { %1412 = vpow2.f32 %v409_v25 }
 0x32f   : > { %v1413_v26 = vpop.eup %1412 }
 0x330   : > { %v411_v27 = vsel %vm329_vm2, %v1413_v26, 0.0 }
 0x331   : > { %412 = vadd.xlane.f32.xlu1 %v411_v27 }
 0x342   : > { %658 = vrot.lane.b32.xlu1 %v1828_v9, %s1600_s26  ;;  %s1902_s26 = scalar_lea.hbm %s1951_s4, %s1223_s23 }
 0x346   : > { %824 = vrot.lane.b32.xlu1 %v1828_v9, %s1601_s10  ;;  %s1093_s10 = scalar_lea.sflag [#allocation4], %s1803_s29 }
 0x3be   : > { %v413_v28 = vpop.xlane.xlu1 %412 }
 0x3bf   : > { %1414 = vrcp.f32 %v413_v28 }
 0x3c2   : > { %v659_v29 = vpop.permute.xlu1 %658 }
 0x3c3   : > { %1286 = vmatmul.mubr.msk.f32.vlgmr.msra.gmra.mrb[2].mxu0 %vm329_vm2, %v659_v29  ;;  %v1220_v29 = vld [vmem:[%s1950_s3] ss:$0 sm:$0xff] }
 0x3c4   : > { %1294 = vmatpush3.xpose.msk.msra.mxu0 %vm329_vm2, %v827_v30  ;;  %1295 = vmatprep.mubr.msk.f32.mxu0 %vm1592_vm0, %v1593_v1 }
 0x3c5   : > { %1320 = vmatprep.subr.bf16.mxu0 %v1591_v0 }
 0x3c6   : > { %v825_v31 = vpop.permute.xlu1 %824 }
 0x3c7   : > { %1296 = vmatmul.mubr.msk.f32.vlgmr.msra.gmra.mrb[4].mxu0 %vm329_vm2, %v825_v31 }
 0x3c8   : > { %1311 = vmatprep.mubr.msk.f32.mxu0 %vm1592_vm0, %v1593_v1 }
 0x3c9   : > { %v1415_v32 = vpop.eup %1414 }
 0x3ca   : > { %v415_v33 = vmul.f32 %v1415_v32, %v1413_v26 }
 0x3cc   : > { %1271 = vmatmul.mubr.msk.f32.vlgmr.msra.gmra.mrb[2].mxu1 %vm329_vm2, %v415_v33 }
 0x3cd   : > { %1274 = vmatpush3.xpose.msk.msra.mxu1 %vm329_vm2, %v495_v13  ;;  %1275 = vmatprep.mubr.msk.f32.mxu1 %vm1592_vm0, %v1593_v1  ;;  %v1007_v13 = vld [vmem:[#allocation7] sm:$0xff] }
 0x3ce   : > { %1278 = vmatprep.subr.mxu1 %v1593_v1 }
 0x3d0   : > { %1276 = vmatmul.mubr.msk.f32.vlgmr.msra.gmra.mrb[4].mxu1 %vm329_vm2, %v493_v14  ;;  %v1008_v14 = vld [vmem:[#allocation7 + $0x8] sm:$0xff] }
 0x3d1   : > { %1280 = vmatprep.mubr.msk.f32.mxu1 %vm1592_vm0, %v1593_v1  ;;  %v1321_v15 = vpack.c.bf16 %v1008_v14, %v1007_v13 }
 0x3d3   : > { %1322 = vmatpush3.bf16.msra.mxu0 %v1321_v15 }
 0x3d4   : > { %1323 = vmatprep.subr.bf16.mxu0 %v1591_v0 }
 0x3d7   : > { %1325 = vmatpush3.bf16.msra.mxu0 %v1324_v18 }
 0x496   : > { %v732_v34 = vpop.f32.mrb[2].mxu0 }
 0x497   : > { %v736_v35 = vsel %vm325_vm3, %v732_v34, -inf  ;;  %v1287_v36 = vpop.f32.mrb[3].mxu0 }
 0x498   : > { %v737_v37 = vsel %vm329_vm2, %v736_v35, -inf }
 0x499   : > { %738 = vmax.xlane.f32.xlu0 %v737_v37 }
 0x49a   : > { %v898_v38 = vpop.f32.mrb[4].mxu0 }
 0x49b   : > { %v1297_v39 = vpop.f32.mrb[5].mxu0  ;;  %v902_v46 = vsel %vm325_vm3, %v898_v38, -inf }
 0x49c   : > { %v903_v47 = vsel %vm329_vm2, %v902_v46, -inf }
 0x49f   : > { %v1868_v40 = vpop.f32.mrb[2].mxu1 }
 0x4a0   : > { %v1272_v41 = vpop.f32.mrb[3].mxu1 }
 0x4a3   : > { %v566_v42 = vpop.f32.mrb[4].mxu1 }
 0x4a4   : > { %v570_v43 = vsel %vm325_vm3, %v566_v42, -inf  ;;  %v1277_v44 = vpop.f32.mrb[5].mxu1 }
 0x4a5   : > { %v571_v45 = vsel %vm329_vm2, %v570_v43, -inf }
 0x4a6   : > { %572 = vmax.xlane.f32.xlu1 %v571_v45 }
 0x4aa   : > { %904 = vmax.xlane.f32.xlu1 %v903_v47 }
 0x526   : > { %v739_v48 = vpop.xlane.xlu0 %738 }
 0x527   : > { %v740_v49 = vsub.f32 %v736_v35, %v739_v48 }
 0x529   : > { %v741_v50 = vmul.f32 1.442695, %v740_v49 }
 0x52b   : > { %1416 = vpow2.f32 %v741_v50 }
 0x533   : > { %v573_v51 = vpop.xlane.xlu1 %572 }
 0x534   : > { %v574_v59 = vsub.f32 %v570_v43, %v573_v51 }
 0x535   : > { %v1417_v52 = vpop.eup %1416 }
 0x536   : > { %v743_v53 = vsel %vm329_vm2, %v1417_v52, 0.0  ;;  %v575_v60 = vmul.f32 1.442695, %v574_v59 }
 0x537   : > { %744 = vadd.xlane.f32.xlu1 %v743_v53  ;;  %v905_v54 = vpop.xlane.xlu1 %904 }
 0x538   : > { %v906_v55 = vsub.f32 %v902_v46, %v905_v54 }
 0x53a   : > { %v907_v56 = vmul.f32 1.442695, %v906_v55 }
 0x53c   : > { %1418 = vpow2.f32 %v907_v56 }
 0x53d   : > { %1420 = vpow2.f32 %v575_v60 }
 0x546   : > { %v1419_v57 = vpop.eup %1418 }
 0x547   : > { %v909_v58 = vsel %vm329_vm2, %v1419_v57, 0.0  ;;  %v1421_v61 = vpop.eup %1420 }
 0x548   : > { %582 = vrot.lane.b32.xlu1 %v1828_v9, %s1602_s24  ;;  %910 = vadd.xlane.f32.xlu0 %v909_v58  ;;  %v577_v62 = vsel %vm329_vm2, %v1421_v61, 0.0  ;;  %s1518_s24 = sshll.u32 %s1608_s25, 4  ;;  %s1519_s24 = int_to_ptr.vmem [resolvable:$false] %s1518_s24 }
 0x549   : > { %p1521_p7 = scmp.lt.s32.totalorder %s1904_s30, %s1519_s24 }
 0x55e   : > { %748 = vrot.lane.b32.xlu0 %v1828_v9, %s1603_s20  ;;  %s1520_s20 = scalar_lea.vmem %s1519_s24, 256 }
 0x55f   : > { %p1522_p9 = scmp.lt.s32.totalorder %s1520_s20, %s1514_s19 }
 0x561   : > { %p1523_p12 = por %p1522_p9, %p1521_p7 }
 0x563   : > { %p1524_p2 = pnand %p1523_p12, %p1517_p3 }
 0x56c   : > { %578 = vadd.xlane.f32.xlu1 %v577_v62 }
 0x57d   : > { %914 = vrot.lane.b32.xlu1 %v1828_v9, %s1604_s28 }
 0x5c4   : > { %v745_v63 = vpop.xlane.xlu1 %744 }
 0x5c8   : > { %v583_v2 = vpop.permute.xlu1 %582 }
 0x5c9   : > { %1279 = vmatpush3.msra.mxu1 %v583_v2 }
 0x5ca   : > { %1288 = vmatprep.subr.mxu1 %v1593_v1 }
 0x5d5   : > { %v911_v4 = vpop.xlane.xlu0 %910 }
 0x5d9   : > { %v749_v8 = vpop.permute.xlu0 %748 }
 0x5f9   : > { %v579_v3 = vpop.xlane.xlu1 %578 }
 0x5fa   : > { %1422 = vrcp.f32 %v579_v3 }
 0x5fb   : > { %1424 = vrcp.f32 %v745_v63 }
 0x5fc   : > { %1426 = vrcp.f32 %v911_v4 }
 0x5fd   : > { %v915_v11 = vpop.permute.xlu1 %914 }
 0x604   : > { %v1423_v5 = vpop.eup %1422 }
 0x605   : > { %v581_v6 = vmul.f32 %v1423_v5, %v1421_v61  ;;  %v1425_v7 = vpop.eup %1424 }
 0x606   : > { %v747_v9 = vmul.f32 %v1425_v7, %v1417_v52  ;;  %v1427_v10 = vpop.eup %1426 }
 0x607   : > { %1281 = vmatmul.mubr.msk.f32.vlgmr.msra.gmra.mrb[6].mxu1 %vm329_vm2, %v581_v6  ;;  %v913_v12 = vmul.f32 %v1427_v10, %v1419_v57 }
 0x608   : > { %1289 = vmatpush3.msra.mxu1 %v749_v8  ;;  %1290 = vmatprep.mubr.msk.f32.mxu1 %vm1592_vm0, %v1593_v1 }
 0x609   : > { %1298 = vmatprep.subr.mxu1 %v1593_v1 }
 0x60b   : > { %1291 = vmatmul.mubr.msk.f32.vlgmr.msra.gmra.mrb[8].mxu1 %vm329_vm2, %v747_v9 }
 0x60c   : > { %1299 = vmatpush3.msra.mxu1 %v915_v11  ;;  %1300 = vmatprep.mubr.msk.f32.mxu1 %vm1592_vm0, %v1593_v1 }
 0x60f   : > { %1301 = vmatmul.mubr.msk.f32.vlgmr.msra.gmra.mrb[10].mxu1 %vm329_vm2, %v913_v12 }
 0x6da   : > { %v654_v19 = vpop.f32.mrb[6].mxu1 }
 0x6db   : > { %991 = vrot.lane.b32.xlu1 %v654_v19, %s1605_s11  ;;  %v1282_v20 = vpop.f32.mrb[7].mxu1 }
 0x6de   : > { %v820_v21 = vpop.f32.mrb[8].mxu1 }
 0x6df   : > { %995 = vrot.lane.b32.xlu0 %v820_v21, %s1606_s12  ;;  %v1292_v1 = vpop.f32.mrb[9].mxu1 }
 0x6e2   : > { %v986_v22 = vpop.f32.mrb[10].mxu1 }
 0x6e3   : > { %999 = vrot.lane.b32.xlu1 %v986_v22, %s1607_s7  ;;  %v1302_v23 = vpop.f32.mrb[11].mxu1 }
 0x74d   : > { %v992_v24 = vpop.permute.xlu1 %991 }
 0x74e   : > { %v1002_v25 = vsel %vm329_vm2, %v1868_v40, %v992_v24 }
 0x751   : > { %v996_v0 = vpop.permute.xlu0 %995 }
 0x752   : > { %v1004_v26 = vsel %vm1003_vm4, %v1002_v25, %v996_v0 }
 0x755   : > { %v1000_v27 = vpop.permute.xlu1 %999 }
 0x756   : > { %v1006_v28 = vsel %vm1005_vm5, %v1004_v26, %v1000_v27 }
 0x757   : > { %1312 = vmatmul.mubr.msk.f32.vlgmr.msra.gmra.mrb[6].mxu0 %vm247_vm1, %v1006_v28 }
 0x82a   : > { %v1087_v30 = vpop.f32.mrb[6].mxu0 }
 0x82b   : > { %v1088_v31 = vadd.f32 %v1220_v29, %v1087_v30  ;;  %v1313_v32 = vpop.f32.mrb[7].mxu0 }
 0x82d   : > { %1091 = vst.msk [vmem:[%s241_s27] sm:$0xff] %vm247_vm1, %v1088_v31 }
 0x82e   : > { %1527 = shalt.err (!%p1524_p2)
}
 0x82f   : > { %s1528_s29 = scalar_lea.hbm %s1902_s26, 128  ;;  %s1532_s12 = scalar_lea.hbm %s1951_s4, 256 }
 0x830   : > { %p1529_p13 = scmp.ne.s32.totalorder %s1902_s26, %s1528_s29  ;;  %p1533_p4 = scmp.lt.u32.totalorder %s1902_s26, %s1951_s4 }
 0x831   : > { %p1534_p5 = scmp.lt.u32.totalorder %s1532_s12, %s1528_s29  ;;  %p1536_p11 = scmp.lt.u32.totalorder %s1528_s29, %s1902_s26 }
 0x832   : > { %p1530_p6 = pnand %p1529_p13, %p1965_p0 }
 0x833   : > { %p1535_p8 = por %p1534_p5, %p1533_p4 }
 0x834   : > { %p1531_p10 = pneg %p1530_p6 }
 0x835   : > { %p1537_p1 = por %p1536_p11, %p1535_p8 }
 0x837   : > { %p1538_p3 = pnand %p1537_p1, %p1531_p10 }
 0x839   : > { %1541 = shalt.err (!%p1538_p3)
}
 0x83a   : > { %1336 = dma.vmem_to_hbm [thread:$0]  (%p1965_p0), %s1904_s30, 128, %s1902_s26, %s1093_s10  }
 0x83b PF: > { %s1118_s21 = sand.u32 1, %s1572_s15   ;;  %p1966_p7 = scmp.ne.s32.totalorder %s1956_s22, 0 }
 0x83c   : > { %p1967_p9 = scmp.ge.s32.totalorder %s1584_s18, 2  ;;  %s1119_s23 = scalar_lea.sflag [#allocation4], %s1118_s21 }
 0x83e   : > { %p1350_p12 = pnand %p1967_p9, %p1966_p7 }
 0x840   : > { %1567 = dma.done.wait (!%p1350_p12), %s1119_s23, 128  }
 0x841   : > { %1569 = vsyncadd (!%p1350_p12), %s1119_s23, 4294967168  ;;  %p18_p2 = scmp.ge.s32.totalorder %s1744_s9, 4   ;;  %s1968_s15 = smov %s1576_s16 }
 0x842   : > { %s1969_s16 = smov %s1580_s17  ;;  %s1970_s17 = smov %s1760_s14 }
 0x843   : > { %s1971_s18 = smov %s1744_s9  ;;  %20 = sbr.rel (!%p18_p2) target bundleno = 6 (0x6), region = 89 }
 0x84a   :  { %1124 = vsyncpa [#allocation3], 1 }
 0x84b   :  { %1126 = vsyncpa [#allocation3 + $0x1], 1 }
 0x84c   :  { %1127 = vsyncpa [#allocation6], 1 }
 0x84d   :  { %1128 = vsyncpa [#allocation4], 1 }
 0x84e   :  { %1130 = vsyncpa [#allocation4 + $0x1], 1 }

</bundles_post_ra>
